<compile_context>
chip_gen: v6e
topology: v6e:2x2x1
jax: 0.10.0
libtpu: 0.0.40
codegen_flags: <defaults>
</compile_context>

<pallas_src>
import functools

import jax
import jax.numpy as jnp
import numpy as np
from jax.experimental import pallas as pl
from jax.experimental.pallas import tpu as pltpu

BN_EPS = 1e-5


def _round_up(x, m):
    return (x + m - 1) // m * m


# ----------------------------- Pallas kernel -------------------------------

def _resblock_kernel(x_ref, w1_ref, s1_ref, b1_ref, w2_ref, s2_ref, b2_ref, o_ref, *, l_true):
    """Fully fused ResBlock for one batch row.

    conv(k=3, pad=1) is computed as 3 MXU dots on pltpu.roll-shifted inputs
    (contraction depth K = Cp = 128-padded channels), with BatchNorm (+conv bias)
    folded into a per-channel scale/shift. The intermediate activation stays in VMEM.
    """
    lp = x_ref.shape[1]
    x = x_ref[0]                                            # (Lp, Cp) f32; rows >= l_true are zero

    def conv_bn(v, w_ref, s_ref, b_ref):
        v_prev = pltpu.roll(v, 1, axis=0)                   # v[l-1]; wrap row (= v[Lp-1]) is zero
        v_next = pltpu.roll(v, lp - 1, axis=0)              # v[l+1]; only row Lp-1 is wrong (unused)
        acc = jnp.dot(v_prev, w_ref[0], preferred_element_type=jnp.float32)
        acc += jnp.dot(v, w_ref[1], preferred_element_type=jnp.float32)
        acc += jnp.dot(v_next, w_ref[2], preferred_element_type=jnp.float32)
        return acc * s_ref[...] + b_ref[...]                # folded BN + conv bias

    # conv1 + bn1 + ReLU
    h = jnp.maximum(conv_bn(x, w1_ref, s1_ref, b1_ref), 0.0)
    # Re-zero padded length rows so conv2's halo reads / roll wrap are exact zeros.
    row = jax.lax.broadcasted_iota(jnp.int32, h.shape, 0)
    h = jnp.where(row < l_true, h, 0.0)
    # conv2 + bn2 + residual + ReLU (padded rows/lanes of the output are sliced off outside,
    # so no final masking is needed).
    y = conv_bn(h, w2_ref, s2_ref, b2_ref) + x
    o_ref[0] = jnp.maximum(y, 0.0)


def resblock_forward(params, x_ncl):
    """x_ncl: (B, C, L) float32, PyTorch Conv1d layout. Returns (B, C, L)."""
    B, C, L = x_ncl.shape
    Cp = params["w1"].shape[1]
    Lp = _round_up(L + 1, 8)

    x = jnp.transpose(x_ncl, (0, 2, 1))                     # (B, L, C)
    x = jnp.pad(x, ((0, 0), (0, Lp - L), (0, Cp - C)))      # (B, Lp, Cp), pads are exact zeros

    kern = functools.partial(_resblock_kernel, l_true=L)
    y = pl.pallas_call(
        kern,
        out_shape=jax.ShapeDtypeStruct((B, Lp, Cp), jnp.float32),
        grid=(B,),
        in_specs=[
            pl.BlockSpec((1, Lp, Cp), lambda b: (b, 0, 0)),
            pl.BlockSpec((3, Cp, Cp), lambda b: (0, 0, 0)),
            pl.BlockSpec((1, Cp), lambda b: (0, 0)),
            pl.BlockSpec((1, Cp), lambda b: (0, 0)),
            pl.BlockSpec((3, Cp, Cp), lambda b: (0, 0, 0)),
            pl.BlockSpec((1, Cp), lambda b: (0, 0)),
            pl.BlockSpec((1, Cp), lambda b: (0, 0)),
        ],
        out_specs=pl.BlockSpec((1, Lp, Cp), lambda b: (b, 0, 0)),
        compiler_params=pltpu.CompilerParams(
            # v7x: the two TensorCores split the batch axis; no-op on single-TC v5e/v6e.
            dimension_semantics=("parallel",),
            # no vmem_limit_bytes: working set (< 1 MiB) fits every chip's default scoped limit.
        ),
    )(x, params["w1"], params["s1"], params["b1"], params["w2"], params["s2"], params["b2"])

    return jnp.transpose(y[:, :L, :C], (0, 2, 1))


# ------------------------- parameters (deterministic) ----------------------

def _make_conv_bn_params(key, c, cp, wscale=0.15):
    k = jax.random.split(key, 6)
    w = wscale * jax.random.normal(k[0], (3, c, c), jnp.float32)       # w[tap, cin, cout]
    cb = wscale * jax.random.normal(k[1], (c,), jnp.float32)           # conv bias
    gamma = 1.0 + 0.1 * jax.random.normal(k[2], (c,), jnp.float32)     # BN weight
    beta = 0.1 * jax.random.normal(k[3], (c,), jnp.float32)            # BN bias
    mean = 0.1 * jax.random.normal(k[4], (c,), jnp.float32)            # running mean
    var = 1.0 + 0.1 * jnp.abs(jax.random.normal(k[5], (c,), jnp.float32))  # running var
    scale = gamma / jnp.sqrt(var + BN_EPS)
    shift = beta - mean * scale + cb * scale
    w_p = jnp.zeros((3, cp, cp), jnp.float32).at[:, :c, :c].set(w)
    s_p = jnp.zeros((1, cp), jnp.float32).at[0, :c].set(scale)
    h_p = jnp.zeros((1, cp), jnp.float32).at[0, :c].set(shift)
    raw = dict(w=w, cb=cb, gamma=gamma, beta=beta, mean=mean, var=var)
    return w_p, s_p, h_p, raw


def init_params(key, num_hidden):
    cp = _round_up(num_hidden, 128)
    k1, k2 = jax.random.split(key)
    w1, s1, b1, raw1 = _make_conv_bn_params(k1, num_hidden, cp)
    w2, s2, b2, raw2 = _make_conv_bn_params(k2, num_hidden, cp)
    return dict(w1=w1, s1=s1, b1=b1, raw1=raw1, w2=w2, s2=s2, b2=b2, raw2=raw2)


# ------------------------- pure-JAX reference (check) ----------------------

def _ref_conv_bn(x_ncl, raw):
    w, cb = raw["w"], raw["cb"]
    gamma, beta, mean, var = raw["gamma"], raw["beta"], raw["mean"], raw["var"]
    B, C, L = x_ncl.shape
    xp = jnp.pad(x_ncl, ((0, 0), (0, 0), (1, 1)))
    out = jnp.zeros((B, C, L), jnp.float32)
    for k in range(3):
        out = out + jnp.einsum("bcl,co->bol", xp[:, :, k:k + L], w[k],
                               precision=jax.lax.Precision.HIGHEST)
    out = out + cb[None, :, None]
    scale = gamma / jnp.sqrt(var + BN_EPS)
    return (out - mean[None, :, None]) * scale[None, :, None] + beta[None, :, None]


def ref_forward(params, x_ncl):
    h = jnp.maximum(_ref_conv_bn(x_ncl, params["raw1"]), 0.0)
    y = _ref_conv_bn(h, params["raw2"]) + x_ncl
    return jnp.maximum(y, 0.0)


# ----------------------------------- main -----------------------------------

if __name__ == "__main__":
    B, C, L = 2, 32, 16                     # batch, num_hidden, sequence length
    key = jax.random.PRNGKey(0)
    kx, kp = jax.random.split(key)
    x = jax.random.normal(kx, (B, C, L), jnp.float32)
    params = init_params(kp, C)

    fwd = jax.jit(resblock_forward)
    out = jax.block_until_ready(fwd(params, x))
    assert out.shape == (B, C, L)

    ref = ref_forward(params, x)
    np.testing.assert_allclose(np.asarray(out), np.asarray(ref), rtol=1e-4, atol=1e-4)

    print("KERNEL_OK")
</pallas_src>

<mosaic_0001>
module attributes {stable_mosaic.version = 11 : i64} {
  func.func @_resblock_kernel(%arg0: i32, %arg1: memref<1x24x128xf32, #tpu.memory_space<vmem>>, %arg2: memref<3x128x128xf32, #tpu.memory_space<vmem>>, %arg3: memref<1x128xf32, #tpu.memory_space<vmem>>, %arg4: memref<1x128xf32, #tpu.memory_space<vmem>>, %arg5: memref<3x128x128xf32, #tpu.memory_space<vmem>>, %arg6: memref<1x128xf32, #tpu.memory_space<vmem>>, %arg7: memref<1x128xf32, #tpu.memory_space<vmem>>, %arg8: memref<1x24x128xf32, #tpu.memory_space<vmem>>) attributes {dimension_semantics = [#tpu.dimension_semantics<parallel>], iteration_bounds = array<i64: 2>, scalar_prefetch = 0 : i64, scratch_operands = 0 : i64, tpu.core_type = #tpu.core_type<tc>, window_params = [{transform_indices = @transform_0, window_bounds = array<i64: 1, 24, 128>}, {pipeline_mode = #tpu.pipeline_mode<synchronous>, transform_indices = @transform_1, window_bounds = array<i64: 3, 128, 128>}, {pipeline_mode = #tpu.pipeline_mode<synchronous>, transform_indices = @transform_2, window_bounds = array<i64: 1, 128>}, {pipeline_mode = #tpu.pipeline_mode<synchronous>, transform_indices = @transform_3, window_bounds = array<i64: 1, 128>}, {pipeline_mode = #tpu.pipeline_mode<synchronous>, transform_indices = @transform_4, window_bounds = array<i64: 3, 128, 128>}, {pipeline_mode = #tpu.pipeline_mode<synchronous>, transform_indices = @transform_5, window_bounds = array<i64: 1, 128>}, {pipeline_mode = #tpu.pipeline_mode<synchronous>, transform_indices = @transform_6, window_bounds = array<i64: 1, 128>}, {transform_indices = @transform_7, window_bounds = array<i64: 1, 24, 128>}]} {
    %c0 = arith.constant 0 : index
    %c0_0 = arith.constant 0 : index
    %c0_1 = arith.constant 0 : index
    %0 = vector.load %arg1[%c0, %c0_0, %c0_1] : memref<1x24x128xf32, #tpu.memory_space<vmem>>, vector<1x24x128xf32>
    %1 = vector.shape_cast %0 : vector<1x24x128xf32> to vector<24x128xf32>
    %c1_i32 = arith.constant 1 : i32
    %2 = tpu.dynamic_rotate %1 by %c1_i32 dim 0 : vector<24x128xf32>, i32 -> vector<24x128xf32>
    %c23_i32 = arith.constant 23 : i32
    %3 = tpu.dynamic_rotate %1 by %c23_i32 dim 0 : vector<24x128xf32>, i32 -> vector<24x128xf32>
    %c0_2 = arith.constant 0 : index
    %c0_3 = arith.constant 0 : index
    %c0_4 = arith.constant 0 : index
    %4 = vector.load %arg2[%c0_2, %c0_3, %c0_4] : memref<3x128x128xf32, #tpu.memory_space<vmem>>, vector<1x128x128xf32>
    %5 = vector.shape_cast %4 : vector<1x128x128xf32> to vector<128x128xf32>
    %cst = arith.constant dense<0.000000e+00> : vector<24x128xf32>
    %6 = tpu.matmul %2, %5, %cst {dimension_numbers = #tpu.dot_dimension_numbers<[1], [0], [0], [1], [0, 0, 1, 1], [], []>} : vector<24x128xf32>, vector<128x128xf32>, vector<24x128xf32> -> vector<24x128xf32>
    %c1 = arith.constant 1 : index
    %c0_5 = arith.constant 0 : index
    %c0_6 = arith.constant 0 : index
    %7 = vector.load %arg2[%c1, %c0_5, %c0_6] : memref<3x128x128xf32, #tpu.memory_space<vmem>>, vector<1x128x128xf32>
    %8 = vector.shape_cast %7 : vector<1x128x128xf32> to vector<128x128xf32>
    %cst_7 = arith.constant dense<0.000000e+00> : vector<24x128xf32>
    %9 = tpu.matmul %1, %8, %cst_7 {dimension_numbers = #tpu.dot_dimension_numbers<[1], [0], [0], [1], [0, 0, 1, 1], [], []>} : vector<24x128xf32>, vector<128x128xf32>, vector<24x128xf32> -> vector<24x128xf32>
    %10 = arith.addf %6, %9 : vector<24x128xf32>
    %c2 = arith.constant 2 : index
    %c0_8 = arith.constant 0 : index
    %c0_9 = arith.constant 0 : index
    %11 = vector.load %arg2[%c2, %c0_8, %c0_9] : memref<3x128x128xf32, #tpu.memory_space<vmem>>, vector<1x128x128xf32>
    %12 = vector.shape_cast %11 : vector<1x128x128xf32> to vector<128x128xf32>
    %cst_10 = arith.constant dense<0.000000e+00> : vector<24x128xf32>
    %13 = tpu.matmul %3, %12, %cst_10 {dimension_numbers = #tpu.dot_dimension_numbers<[1], [0], [0], [1], [0, 0, 1, 1], [], []>} : vector<24x128xf32>, vector<128x128xf32>, vector<24x128xf32> -> vector<24x128xf32>
    %14 = arith.addf %10, %13 : vector<24x128xf32>
    %c0_11 = arith.constant 0 : index
    %c0_12 = arith.constant 0 : index
    %15 = vector.load %arg3[%c0_11, %c0_12] : memref<1x128xf32, #tpu.memory_space<vmem>>, vector<1x128xf32>
    %16 = vector.broadcast %15 : vector<1x128xf32> to vector<24x128xf32>
    %17 = arith.mulf %14, %16 : vector<24x128xf32>
    %c0_13 = arith.constant 0 : index
    %c0_14 = arith.constant 0 : index
    %18 = vector.load %arg4[%c0_13, %c0_14] : memref<1x128xf32, #tpu.memory_space<vmem>>, vector<1x128xf32>
    %19 = vector.broadcast %18 : vector<1x128xf32> to vector<24x128xf32>
    %20 = arith.addf %17, %19 : vector<24x128xf32>
    %cst_15 = arith.constant 0.000000e+00 : f32
    %21 = vector.broadcast %cst_15 : f32 to vector<24x128xf32>
    %22 = arith.maximumf %20, %21 : vector<24x128xf32>
    %23 = tpu.iota {dimensions = array<i32: 0>} : vector<24x128xi32>
    %c16_i32 = arith.constant 16 : i32
    %24 = vector.broadcast %c16_i32 : i32 to vector<24x128xi32>
    %25 = arith.cmpi slt, %23, %24 : vector<24x128xi32>
    %cst_16 = arith.constant 0.000000e+00 : f32
    %26 = vector.broadcast %cst_16 : f32 to vector<24x128xf32>
    %27 = arith.select %25, %22, %26 : vector<24x128xi1>, vector<24x128xf32>
    %c1_i32_17 = arith.constant 1 : i32
    %28 = tpu.dynamic_rotate %27 by %c1_i32_17 dim 0 : vector<24x128xf32>, i32 -> vector<24x128xf32>
    %c23_i32_18 = arith.constant 23 : i32
    %29 = tpu.dynamic_rotate %27 by %c23_i32_18 dim 0 : vector<24x128xf32>, i32 -> vector<24x128xf32>
    %c0_19 = arith.constant 0 : index
    %c0_20 = arith.constant 0 : index
    %c0_21 = arith.constant 0 : index
    %30 = vector.load %arg5[%c0_19, %c0_20, %c0_21] : memref<3x128x128xf32, #tpu.memory_space<vmem>>, vector<1x128x128xf32>
    %31 = vector.shape_cast %30 : vector<1x128x128xf32> to vector<128x128xf32>
    %cst_22 = arith.constant dense<0.000000e+00> : vector<24x128xf32>
    %32 = tpu.matmul %28, %31, %cst_22 {dimension_numbers = #tpu.dot_dimension_numbers<[1], [0], [0], [1], [0, 0, 1, 1], [], []>} : vector<24x128xf32>, vector<128x128xf32>, vector<24x128xf32> -> vector<24x128xf32>
    %c1_23 = arith.constant 1 : index
    %c0_24 = arith.constant 0 : index
    %c0_25 = arith.constant 0 : index
    %33 = vector.load %arg5[%c1_23, %c0_24, %c0_25] : memref<3x128x128xf32, #tpu.memory_space<vmem>>, vector<1x128x128xf32>
    %34 = vector.shape_cast %33 : vector<1x128x128xf32> to vector<128x128xf32>
    %cst_26 = arith.constant dense<0.000000e+00> : vector<24x128xf32>
    %35 = tpu.matmul %27, %34, %cst_26 {dimension_numbers = #tpu.dot_dimension_numbers<[1], [0], [0], [1], [0, 0, 1, 1], [], []>} : vector<24x128xf32>, vector<128x128xf32>, vector<24x128xf32> -> vector<24x128xf32>
    %36 = arith.addf %32, %35 : vector<24x128xf32>
    %c2_27 = arith.constant 2 : index
    %c0_28 = arith.constant 0 : index
    %c0_29 = arith.constant 0 : index
    %37 = vector.load %arg5[%c2_27, %c0_28, %c0_29] : memref<3x128x128xf32, #tpu.memory_space<vmem>>, vector<1x128x128xf32>
    %38 = vector.shape_cast %37 : vector<1x128x128xf32> to vector<128x128xf32>
    %cst_30 = arith.constant dense<0.000000e+00> : vector<24x128xf32>
    %39 = tpu.matmul %29, %38, %cst_30 {dimension_numbers = #tpu.dot_dimension_numbers<[1], [0], [0], [1], [0, 0, 1, 1], [], []>} : vector<24x128xf32>, vector<128x128xf32>, vector<24x128xf32> -> vector<24x128xf32>
    %40 = arith.addf %36, %39 : vector<24x128xf32>
    %c0_31 = arith.constant 0 : index
    %c0_32 = arith.constant 0 : index
    %41 = vector.load %arg6[%c0_31, %c0_32] : memref<1x128xf32, #tpu.memory_space<vmem>>, vector<1x128xf32>
    %42 = vector.broadcast %41 : vector<1x128xf32> to vector<24x128xf32>
    %43 = arith.mulf %40, %42 : vector<24x128xf32>
    %c0_33 = arith.constant 0 : index
    %c0_34 = arith.constant 0 : index
    %44 = vector.load %arg7[%c0_33, %c0_34] : memref<1x128xf32, #tpu.memory_space<vmem>>, vector<1x128xf32>
    %45 = vector.broadcast %44 : vector<1x128xf32> to vector<24x128xf32>
    %46 = arith.addf %43, %45 : vector<24x128xf32>
    %47 = arith.addf %46, %1 : vector<24x128xf32>
    %cst_35 = arith.constant 0.000000e+00 : f32
    %48 = vector.broadcast %cst_35 : f32 to vector<24x128xf32>
    %49 = arith.maximumf %47, %48 : vector<24x128xf32>
    %c0_36 = arith.constant 0 : index
    %c0_37 = arith.constant 0 : index
    %c0_38 = arith.constant 0 : index
    %50 = vector.load %arg8[%c0_36, %c0_37, %c0_38] : memref<1x24x128xf32, #tpu.memory_space<vmem>>, vector<1x24x128xf32>
    %51 = vector.shape_cast %50 : vector<1x24x128xf32> to vector<24x128xf32>
    %52 = vector.shape_cast %49 : vector<24x128xf32> to vector<1x24x128xf32>
    tpu.vector_store %arg8[%c0_36, %c0_37, %c0_38], %52 {strides = array<i32>} : memref<1x24x128xf32, #tpu.memory_space<vmem>>, vector<1x24x128xf32>,
    return
  }
  func.func @transform_0(%arg0: i32) -> (i32, i32, i32) {
    %c0_i32 = arith.constant 0 : i32
    %c0_i32_0 = arith.constant 0 : i32
    %c0_i32_1 = arith.constant 0 : i32
    return %arg0, %c0_i32, %c0_i32_0 : i32, i32, i32
  }
  func.func @transform_1(%arg0: i32) -> (i32, i32, i32) {
    %c0_i32 = arith.constant 0 : i32
    %c0_i32_0 = arith.constant 0 : i32
    %c0_i32_1 = arith.constant 0 : i32
    %c0_i32_2 = arith.constant 0 : i32
    return %c0_i32, %c0_i32_0, %c0_i32_1 : i32, i32, i32
  }
  func.func @transform_2(%arg0: i32) -> (i32, i32) {
    %c0_i32 = arith.constant 0 : i32
    %c0_i32_0 = arith.constant 0 : i32
    %c0_i32_1 = arith.constant 0 : i32
    return %c0_i32, %c0_i32_0 : i32, i32
  }
  func.func @transform_3(%arg0: i32) -> (i32, i32) {
    %c0_i32 = arith.constant 0 : i32
    %c0_i32_0 = arith.constant 0 : i32
    %c0_i32_1 = arith.constant 0 : i32
    return %c0_i32, %c0_i32_0 : i32, i32
  }
  func.func @transform_4(%arg0: i32) -> (i32, i32, i32) {
    %c0_i32 = arith.constant 0 : i32
    %c0_i32_0 = arith.constant 0 : i32
    %c0_i32_1 = arith.constant 0 : i32
    %c0_i32_2 = arith.constant 0 : i32
    return %c0_i32, %c0_i32_0, %c0_i32_1 : i32, i32, i32
  }
  func.func @transform_5(%arg0: i32) -> (i32, i32) {
    %c0_i32 = arith.constant 0 : i32
    %c0_i32_0 = arith.constant 0 : i32
    %c0_i32_1 = arith.constant 0 : i32
    return %c0_i32, %c0_i32_0 : i32, i32
  }
  func.func @transform_6(%arg0: i32) -> (i32, i32) {
    %c0_i32 = arith.constant 0 : i32
    %c0_i32_0 = arith.constant 0 : i32
    %c0_i32_1 = arith.constant 0 : i32
    return %c0_i32, %c0_i32_0 : i32, i32
  }
  func.func @transform_7(%arg0: i32) -> (i32, i32, i32) {
    %c0_i32 = arith.constant 0 : i32
    %c0_i32_0 = arith.constant 0 : i32
    %c0_i32_1 = arith.constant 0 : i32
    return %arg0, %c0_i32, %c0_i32_0 : i32, i32, i32
  }
}

</mosaic_0001>

<bundles_post_ra>
// kernel: resblock_forward.1
= control target key start
LH: loop header
LB: loop body
LE: loop exit
PB: predicated region body
PF: predicated region fallthrough
CT: control target
= control target key end

     0   :  { %12 = vsyncpa [#allocation3], 0  ;;  %s1876_s0 = inlined_call_operand.vmem [shape: f32[2,24,128], index: 0, kind: input, shape index: {}]   ;;  %s1877_s1 = inlined_call_operand.hbm [shape: f32[3,128,128], index: 1, kind: input, shape index: {}]   ;;  %s1878_s2 = inlined_call_operand.vmem [shape: f32[1,128], index: 2, kind: input, shape index: {}]   ;;  %s1879_s3 = inlined_call_operand.vmem [shape: f32[1,128], index: 3, kind: input, shape index: {}]   ;;  %s1880_s4 = inlined_call_operand.hbm [shape: f32[3,128,128], index: 4, kind: input, shape index: {}]   ;;  %s1881_s5 = inlined_call_operand.vmem [shape: f32[1,128], index: 5, kind: input, shape index: {}]   ;;  %s1882_s6 = inlined_call_operand.vmem [shape: f32[1,128], index: 6, kind: input, shape index: {}]   ;;  %s1883_s7 = inlined_call_operand.vmem [shape: f32[2,24,128], index: 7, kind: output, shape index: {}]  }
   0x1   :  { %13 = vsyncpa [#allocation5], 0  ;;  %s1588_s24 = smov 0  }
   0x2 LB: > { %s1594_s25 = sadd.s32 4294967295, %s1540_s24   ;;  %p1065_p0 = scmp.ge.s32.totalorder %s1540_s24, 1  ;;  %s1540_s24 = sphi %s1588_s24, %s19_s24  }
   0x3   : > { %p202_p1 = scmp.lt.s32.totalorder %s1540_s24, 3  ;;  %s1542_s26 = smov [#allocation2]  }
   0x4   : > { %s214_s27 = sshll.u32 %s1542_s26, 4  ;;  %p1456_p3 = scmp.eq.s32.totalorder %s1594_s25, 0  ;;  %s215_s27 = int_to_ptr.vmem [resolvable:$true] %s214_s27 }
   0x5   : > { %p1598_p2 = pnand %p1065_p0, %p202_p1  ;;  %s1543_s29 = smov [#allocation4]  }
   0x6   : > { %s233_s30 = sshll.u32 %s1543_s29, 4  ;;  %s1485_s9 = scalar_lea.vmem %s215_s27, 6144  ;;  %s234_s30 = int_to_ptr.vmem [resolvable:$true] %s233_s30 }
   0x7   : > { %p1449_p4 = pneg %p1598_p2  ;;  %p1486_p7 = scmp.ne.s32.totalorder %s215_s27, %s1485_s9 }
   0x8   : > { %p1493_p10 = scmp.lt.s32.totalorder %s215_s27, %s215_s27  ;;  %p1494_p11 = scmp.lt.s32.totalorder %s1485_s9, %s1485_s9 }
   0x9   : > { %p1607_p5 = pnand %p1456_p3, %p1449_p4 }
   0xa   : > { %p1495_p12 = por %p1494_p11, %p1493_p10 }
   0xb   : > { %p1476_p6 = pneg %p1607_p5 }
   0xd   : > { %p1488_p8 = pnand %p1486_p7, %p1476_p6 }
   0xf   : > { %p1489_p9 = pneg %p1488_p8 }
  0x11   : > { %p1496_p13 = pnand %p1495_p12, %p1489_p9 }
  0x13   : > { %1499 = shalt.err (!%p1496_p13)
}
  0x14   : > { %s1544_s10 = smov 128   ;;  %s1545_s11 = smov 8  }
  0x15   : > { %1452 = dma.hbm_to_vmem [thread:$0]  (!%p1607_p5), %s1877_s1, 6144, %s215_s27, [#allocation3], %s1544_s10, %s1544_s10, %s1545_s11  }
  0x16   : > { %s1511_s14 = scalar_lea.vmem %s234_s30, 6144  ;;  %p1519_p7 = scmp.lt.s32.totalorder %s234_s30, %s234_s30 }
  0x17   : > { %p1512_p0 = scmp.ne.s32.totalorder %s234_s30, %s1511_s14  ;;  %p1520_p8 = scmp.lt.s32.totalorder %s1511_s14, %s1511_s14 }
  0x19   : > { %p1514_p1 = pnand %p1512_p0, %p1476_p6  ;;  %p1521_p10 = por %p1520_p8, %p1519_p7 }
  0x1b   : > { %p1515_p4 = pneg %p1514_p1 }
  0x1d   : > { %p1522_p9 = pnand %p1521_p10, %p1515_p4 }
  0x1f   : > { %1525 = shalt.err (!%p1522_p9)
}
  0x20   : > { %1455 = dma.hbm_to_vmem [thread:$0]  (!%p1607_p5), %s1880_s4, 6144, %s234_s30, [#allocation5], %s1544_s10, %s1544_s10, %s1545_s11  }
  0x21   : > { %263 = sbr.rel (%p1598_p2) target bundleno = 552 (0x228), region = 48 }
  0x26   : > { %1531 = dma.done.wait (%p1456_p3), [#allocation3], 6144  }
  0x27   : > { %1533 = vsyncadd (%p1456_p3), [#allocation3], 4294961152 }
  0x28   : > { %1535 = dma.done.wait (%p1456_p3), [#allocation5], 6144  }
  0x29   : > { %1537 = vsyncadd (%p1456_p3), [#allocation5], 4294961152  ;;  %v1546_v0 = vmov 0.0   ;;  %vm1547_vm0 = vmmov 0   ;;  %v360_v1 = vld [vmem:[#allocation2 + $0xf8] sm:$0xff]  ;;  %v359_v3 = vld [vmem:[#allocation2 + $0xf0] sm:$0xff]  ;;  %v315_v23 = vlaneseq }
  0x2a   : > { %1194 = vmatprep.subr.mxu0 %v1546_v0  ;;  %1235 = vmatprep.subr.mxu1 %v1546_v0  ;;  %v343_v2 = vld [vmem:[#allocation2 + $0x78] sm:$0xff]  ;;  %v342_v4 = vld [vmem:[#allocation2 + $0x70] sm:$0xff]  ;;  %v358_v5 = vld [vmem:[#allocation2 + $0xe8] sm:$0xff]  ;;  %p299_p2 = scmp.lt.s32.totalorder %s1594_s25, 1 }
  0x2b   : > { %1226 = vmatprep.mubr.msk.f32.mxu0 %vm1547_vm0, %v1546_v0  ;;  %1267 = vmatprep.mubr.msk.f32.mxu1 %vm1547_vm0, %v1546_v0  ;;  %v341_v6 = vld [vmem:[#allocation2 + $0x68] sm:$0xff]  ;;  %v357_v7 = vld [vmem:[#allocation2 + $0xe0] sm:$0xff]  ;;  %v356_v9 = vld [vmem:[#allocation2 + $0xd8] sm:$0xff]  ;;  %v1681_v30 = vshrl.u32 %v315_v23, 7 }
  0x2c   : > { %1195 = vmatpush3.msra.mxu0 %v360_v1  ;;  %1236 = vmatpush3.msra.mxu1 %v343_v2  ;;  %v340_v8 = vld [vmem:[#allocation2 + $0x60] sm:$0xff]  ;;  %v339_v10 = vld [vmem:[#allocation2 + $0x58] sm:$0xff]  ;;  %v355_v11 = vld [vmem:[#allocation2 + $0xd0] sm:$0xff]  ;;  %s1887_s25 = smov (!%p299_p2, %s1594_s25), 1 }
  0x2d   : > { %1196 = vmatprep.subr.mxu0 %v1546_v0  ;;  %1237 = vmatprep.subr.mxu1 %v1546_v0  ;;  %v338_v12 = vld [vmem:[#allocation2 + $0x50] sm:$0xff]  ;;  %v354_v13 = vld [vmem:[#allocation2 + $0xc8] sm:$0xff]  ;;  %v353_v15 = vld [vmem:[#allocation2 + $0xc0] sm:$0xff]  ;;  %s1440_s17 = smul.u32 24, %s1887_s25  ;;  %vm317_vm1 = vcmp.lt.s32.totalorder %v1681_v30, 1  ;;  %vm324_vm2 = vcmp.lt.s32.totalorder %v1681_v30, 7 }
  0x2e   : > { %1197 = vmatpush3.msra.mxu0 %v359_v3  ;;  %1238 = vmatpush3.msra.mxu1 %v342_v4  ;;  %v337_v14 = vld [vmem:[#allocation2 + $0x48] sm:$0xff]  ;;  %v336_v16 = vld [vmem:[#allocation2 + $0x40] sm:$0xff]  ;;  %v352_v17 = vld [vmem:[#allocation2 + $0xb8] sm:$0xff] }
  0x2f   : > { %1198 = vmatprep.subr.mxu0 %v1546_v0  ;;  %1239 = vmatprep.subr.mxu1 %v1546_v0  ;;  %v335_v18 = vld [vmem:[#allocation2 + $0x38] sm:$0xff]  ;;  %v351_v19 = vld [vmem:[#allocation2 + $0xb0] sm:$0xff]  ;;  %v350_v21 = vld [vmem:[#allocation2 + $0xa8] sm:$0xff]  ;;  %s303_s20 = scalar_lea.vmem %s1876_s0, %s1440_s17  ;;  %s308_s10 = scalar_lea.vmem %s1883_s7, %s1440_s17 }
  0x30   : > { %1199 = vmatpush3.msra.mxu0 %v358_v5  ;;  %1240 = vmatpush3.msra.mxu1 %v341_v6  ;;  %v334_v20 = vld [vmem:[#allocation2 + $0x30] sm:$0xff]  ;;  %v333_v22 = vld [vmem:[#allocation2 + $0x28] sm:$0xff]  ;;  %v349_v24 = vld [vmem:[#allocation2 + $0xa0] sm:$0xff] }
  0x31   : > { %1200 = vmatprep.subr.mxu0 %v1546_v0  ;;  %1241 = vmatprep.subr.mxu1 %v1546_v0  ;;  %v332_v25 = vld [vmem:[#allocation2 + $0x20] sm:$0xff]  ;;  %v348_v26 = vld [vmem:[#allocation2 + $0x98] sm:$0xff]  ;;  %v1679_v29 = vld [vmem:[%s303_s20 + $0x10] sm:$0xff] }
  0x32   : > { %1201 = vmatpush3.msra.mxu0 %v357_v7  ;;  %1242 = vmatpush3.msra.mxu1 %v340_v8  ;;  %v331_v27 = vld [vmem:[#allocation2 + $0x18] sm:$0xff]  ;;  %v1677_v28 = vld [vmem:[%s303_s20] sm:$0xff]  ;;  %v347_v31 = vld [vmem:[#allocation2 + $0x90] sm:$0xff]  ;;  %v314_v36 = vrot.slane %v1679_v29, 7  ;;  %v323_v62 = vrot.slane %v1679_v29, 1 }
  0x33   : > { %1202 = vmatprep.subr.mxu0 %v1546_v0  ;;  %1243 = vmatprep.subr.mxu1 %v1546_v0  ;;  %v330_v32 = vld [vmem:[#allocation2 + $0x10] sm:$0xff]  ;;  %v346_v33 = vld [vmem:[#allocation2 + $0x88] sm:$0xff]  ;;  %v312_v35 = vrot.slane %v1677_v28, 7  ;;  %v345_v38 = vld [vmem:[#allocation2 + $0x80] sm:$0xff]  ;;  %v321_v57 = vrot.slane %v1677_v28, 1 }
  0x34   : > { %1203 = vmatpush3.msra.mxu0 %v356_v9  ;;  %1244 = vmatpush3.msra.mxu1 %v339_v10  ;;  %v329_v34 = vld [vmem:[#allocation2 + $0x8] sm:$0xff]  ;;  %v328_v39 = vld [vmem:[#allocation2] sm:$0xff]  ;;  %v537_v41 = vld [vmem:[#allocation2 + $0x178] sm:$0xff] }
  0x35   : > { %1204 = vmatprep.subr.mxu0 %v1546_v0  ;;  %1245 = vmatprep.subr.mxu1 %v1546_v0  ;;  %v1690_v37 = vld [vmem:[%s303_s20 + $0x8] sm:$0xff]  ;;  %v320_v40 = vsel %vm317_vm1, %v314_v36, %v312_v35  ;;  %v536_v43 = vld [vmem:[#allocation2 + $0x170] sm:$0xff]  ;;  %v534_v46 = vld [vmem:[#allocation2 + $0x160] sm:$0xff] }
  0x36   : > { %1205 = vmatpush3.msra.mxu0 %v355_v11  ;;  %1246 = vmatpush3.msra.mxu1 %v338_v12  ;;  %v313_v42 = vrot.slane %v1690_v37, 7  ;;  %v535_v44 = vld [vmem:[#allocation2 + $0x168] sm:$0xff]  ;;  %v533_v47 = vld [vmem:[#allocation2 + $0x158] sm:$0xff]  ;;  %v532_v48 = vld [vmem:[#allocation2 + $0x150] sm:$0xff]  ;;  %v322_v58 = vrot.slane %v1690_v37, 1 }
  0x37   : > { %1206 = vmatprep.subr.mxu0 %v1546_v0  ;;  %1247 = vmatprep.subr.mxu1 %v1546_v0  ;;  %v531_v49 = vld [vmem:[#allocation2 + $0x148] sm:$0xff]  ;;  %v530_v50 = vld [vmem:[#allocation2 + $0x140] sm:$0xff]  ;;  %v529_v51 = vld [vmem:[#allocation2 + $0x138] sm:$0xff] }
  0x38   : > { %1207 = vmatpush3.msra.mxu0 %v354_v13  ;;  %1248 = vmatpush3.msra.mxu1 %v337_v14  ;;  %v319_v45 = vsel %vm317_vm1, %v312_v35, %v313_v42  ;;  %v528_v52 = vld [vmem:[#allocation2 + $0x130] sm:$0xff]  ;;  %v527_v53 = vld [vmem:[#allocation2 + $0x128] sm:$0xff]  ;;  %v526_v54 = vld [vmem:[#allocation2 + $0x120] sm:$0xff]  ;;  %v326_v61 = vsel %vm324_vm2, %v321_v57, %v322_v58  ;;  %v325_v63 = vsel %vm324_vm2, %v322_v58, %v323_v62 }
  0x39   : > { %1208 = vmatprep.subr.mxu0 %v1546_v0  ;;  %1249 = vmatprep.subr.mxu1 %v1546_v0  ;;  %v525_v55 = vld [vmem:[#allocation2 + $0x118] sm:$0xff]  ;;  %v524_v56 = vld [vmem:[#allocation2 + $0x110] sm:$0xff]  ;;  %v523_v59 = vld [vmem:[#allocation2 + $0x108] sm:$0xff]  ;;  %v327_v35 = vsel %vm324_vm2, %v323_v62, %v321_v57 }
  0x3a   : > { %1209 = vmatpush3.msra.mxu0 %v353_v15  ;;  %1250 = vmatpush3.msra.mxu1 %v336_v16  ;;  %v522_v60 = vld [vmem:[#allocation2 + $0x100] sm:$0xff]  ;;  %v696_v1 = vld [vmem:[#allocation4 + $0xf8] sm:$0xff]  ;;  %v695_v2 = vld [vmem:[#allocation4 + $0xf0] sm:$0xff] }
  0x3b   : > { %1210 = vmatprep.subr.mxu0 %v1546_v0  ;;  %1251 = vmatprep.subr.mxu1 %v1546_v0  ;;  %v679_v3 = vld [vmem:[#allocation4 + $0x78] sm:$0xff]  ;;  %v678_v4 = vld [vmem:[#allocation4 + $0x70] sm:$0xff]  ;;  %v694_v5 = vld [vmem:[#allocation4 + $0xe8] sm:$0xff] }
  0x3c   : > { %1211 = vmatpush3.msra.mxu0 %v352_v17  ;;  %1252 = vmatpush3.msra.mxu1 %v335_v18  ;;  %v677_v6 = vld [vmem:[#allocation4 + $0x68] sm:$0xff]  ;;  %v693_v7 = vld [vmem:[#allocation4 + $0xe0] sm:$0xff]  ;;  %v692_v9 = vld [vmem:[#allocation4 + $0xd8] sm:$0xff] }
  0x3d   : > { %1212 = vmatprep.subr.mxu0 %v1546_v0  ;;  %1253 = vmatprep.subr.mxu1 %v1546_v0  ;;  %v676_v8 = vld [vmem:[#allocation4 + $0x60] sm:$0xff]  ;;  %v675_v10 = vld [vmem:[#allocation4 + $0x58] sm:$0xff]  ;;  %v691_v11 = vld [vmem:[#allocation4 + $0xd0] sm:$0xff] }
  0x3e   : > { %1213 = vmatpush3.msra.mxu0 %v351_v19  ;;  %1254 = vmatpush3.msra.mxu1 %v334_v20  ;;  %v674_v12 = vld [vmem:[#allocation4 + $0x50] sm:$0xff]  ;;  %v690_v13 = vld [vmem:[#allocation4 + $0xc8] sm:$0xff]  ;;  %v689_v15 = vld [vmem:[#allocation4 + $0xc0] sm:$0xff] }
  0x3f   : > { %1214 = vmatprep.subr.mxu0 %v1546_v0  ;;  %1255 = vmatprep.subr.mxu1 %v1546_v0  ;;  %v673_v14 = vld [vmem:[#allocation4 + $0x48] sm:$0xff]  ;;  %v672_v16 = vld [vmem:[#allocation4 + $0x40] sm:$0xff]  ;;  %v688_v17 = vld [vmem:[#allocation4 + $0xb8] sm:$0xff] }
  0x40   : > { %1215 = vmatpush3.msra.mxu0 %v350_v21  ;;  %1256 = vmatpush3.msra.mxu1 %v333_v22  ;;  %v671_v18 = vld [vmem:[#allocation4 + $0x38] sm:$0xff]  ;;  %v687_v19 = vld [vmem:[#allocation4 + $0xb0] sm:$0xff]  ;;  %v686_v21 = vld [vmem:[#allocation4 + $0xa8] sm:$0xff] }
  0x41   : > { %1216 = vmatprep.subr.mxu0 %v1546_v0  ;;  %1257 = vmatprep.subr.mxu1 %v1546_v0  ;;  %v670_v20 = vld [vmem:[#allocation4 + $0x30] sm:$0xff]  ;;  %v685_v22 = vld [vmem:[#allocation4 + $0xa0] sm:$0xff]  ;;  %v684_v23 = vld [vmem:[#allocation4 + $0x98] sm:$0xff] }
  0x42   : > { %1217 = vmatpush3.msra.mxu0 %v349_v24  ;;  %1258 = vmatpush3.msra.mxu1 %v332_v25  ;;  %v669_v24 = vld [vmem:[#allocation4 + $0x28] sm:$0xff]  ;;  %v318_v25 = vsel %vm317_vm1, %v313_v42, %v314_v36 }
  0x43   : > { %1218 = vmatprep.subr.mxu0 %v1546_v0  ;;  %1259 = vmatprep.subr.mxu1 %v1546_v0  ;;  %v665_v36 = vld [vmem:[#allocation4 + $0x8] sm:$0xff] }
  0x44   : > { %1219 = vmatpush3.msra.mxu0 %v348_v26  ;;  %1260 = vmatpush3.msra.mxu1 %v331_v27  ;;  %v683_v26 = vld [vmem:[#allocation4 + $0x90] sm:$0xff]  ;;  %v668_v27 = vld [vmem:[#allocation4 + $0x20] sm:$0xff] }
  0x45   : > { %1220 = vmatprep.subr.mxu0 %v1546_v0  ;;  %1261 = vmatprep.subr.mxu1 %v1546_v0 }
  0x46   : > { %1221 = vmatpush3.msra.mxu0 %v347_v31  ;;  %1262 = vmatpush3.msra.mxu1 %v330_v32  ;;  %v682_v31 = vld [vmem:[#allocation4 + $0x88] sm:$0xff]  ;;  %v667_v32 = vld [vmem:[#allocation4 + $0x18] sm:$0xff] }
  0x47   : > { %1222 = vmatprep.subr.mxu0 %v1546_v0  ;;  %1263 = vmatprep.subr.mxu1 %v1546_v0 }
  0x48   : > { %1223 = vmatpush3.msra.mxu0 %v346_v33  ;;  %1264 = vmatpush3.msra.mxu1 %v329_v34  ;;  %v681_v33 = vld [vmem:[#allocation4 + $0x80] sm:$0xff]  ;;  %v666_v34 = vld [vmem:[#allocation4 + $0x10] sm:$0xff] }
  0x49   : > { %1224 = vmatprep.subr.mxu0 %v1546_v0  ;;  %1265 = vmatprep.subr.mxu1 %v1546_v0 }
  0x4a   : > { %1225 = vmatpush3.msra.mxu0 %v345_v38  ;;  %1266 = vmatpush3.msra.mxu1 %v328_v39  ;;  %v664_v38 = vld [vmem:[#allocation4] sm:$0xff] }
  0x4b   : > { %1227 = vmatmul.mubr.f32.vlgmr.msra.gmra.mxu0 %v1677_v28  ;;  %1276 = vmatprep.subr.mxu0 %v1546_v0 }
  0x4c   : > { %1268 = vmatmul.mubr.f32.vlgmr.msra.gmra.mxu1 %v320_v40  ;;  %1277 = vmatpush3.msra.mxu0 %v537_v41 }
  0x4d   : > { %1278 = vmatprep.subr.mxu0 %v1546_v0  ;;  %1229 = vmatprep.mubr.msk.f32.mxu0 %vm1547_vm0, %v1546_v0 }
  0x4e   : > { %1279 = vmatpush3.msra.mxu0 %v536_v43  ;;  %1270 = vmatprep.mubr.msk.f32.mxu1 %vm1547_vm0, %v1546_v0 }
  0x4f   : > { %1280 = vmatprep.subr.mxu0 %v1546_v0  ;;  %1230 = vmatmul.mubr.f32.gmra.mxu0 %v1690_v37 }
  0x50   : > { %1281 = vmatpush3.msra.mxu0 %v535_v44  ;;  %1271 = vmatmul.mubr.f32.gmra.mxu1 %v319_v45 }
  0x51   : > { %1282 = vmatprep.subr.mxu0 %v1546_v0  ;;  %1232 = vmatprep.mubr.msk.f32.mxu0 %vm1547_vm0, %v1546_v0 }
  0x52   : > { %1283 = vmatpush3.msra.mxu0 %v534_v46  ;;  %1317 = vmatprep.subr.mxu1 %v1546_v0 }
  0x53   : > { %1284 = vmatprep.subr.mxu0 %v1546_v0  ;;  %1233 = vmatmul.mubr.f32.gmra.mxu0 %v1679_v29 }
  0x54   : > { %1285 = vmatpush3.msra.mxu0 %v533_v47  ;;  %1308 = vmatprep.mubr.msk.f32.mxu0 %vm1547_vm0, %v1546_v0 }
  0x55   : > { %1286 = vmatprep.subr.mxu0 %v1546_v0  ;;  %1273 = vmatprep.mubr.msk.f32.mxu1 %vm1547_vm0, %v1546_v0 }
  0x56   : > { %1287 = vmatpush3.msra.mxu0 %v532_v48  ;;  %1318 = vmatpush3.msra.mxu1 %v696_v1  ;;  %v654_v1 = vrot.slane %v1546_v0, 7 }
  0x57   : > { %1288 = vmatprep.subr.mxu0 %v1546_v0  ;;  %1319 = vmatprep.subr.mxu1 %v1546_v0 }
  0x58   : > { %1289 = vmatpush3.msra.mxu0 %v531_v49  ;;  %1320 = vmatpush3.msra.mxu1 %v695_v2 }
  0x59   : > { %1290 = vmatprep.subr.mxu0 %v1546_v0  ;;  %1321 = vmatprep.subr.mxu1 %v1546_v0 }
  0x5a   : > { %1291 = vmatpush3.msra.mxu0 %v530_v50  ;;  %1322 = vmatpush3.msra.mxu1 %v694_v5 }
  0x5b   : > { %1292 = vmatprep.subr.mxu0 %v1546_v0  ;;  %1323 = vmatprep.subr.mxu1 %v1546_v0 }
  0x5c   : > { %1293 = vmatpush3.msra.mxu0 %v529_v51  ;;  %1324 = vmatpush3.msra.mxu1 %v693_v7  ;;  %v1074_v51 = vld [vmem:[%s1878_s2] ss:$0 sm:$0xff]  ;;  %v871_v7 = vld [vmem:[#allocation4 + $0x168] sm:$0xff] }
  0x5d   : > { %1294 = vmatprep.subr.mxu0 %v1546_v0  ;;  %1325 = vmatprep.subr.mxu1 %v1546_v0 }
  0x5e   : > { %1295 = vmatpush3.msra.mxu0 %v528_v52  ;;  %1326 = vmatpush3.msra.mxu1 %v692_v9 }
  0x5f   : > { %1296 = vmatprep.subr.mxu0 %v1546_v0  ;;  %1327 = vmatprep.subr.mxu1 %v1546_v0 }
  0x60   : > { %1297 = vmatpush3.msra.mxu0 %v527_v53  ;;  %1328 = vmatpush3.msra.mxu1 %v691_v11  ;;  %v1075_v53 = vld [vmem:[%s1879_s3] ss:$0 sm:$0xff]  ;;  %v869_v11 = vld [vmem:[#allocation4 + $0x158] sm:$0xff] }
  0x61   : > { %1298 = vmatprep.subr.mxu0 %v1546_v0  ;;  %1329 = vmatprep.subr.mxu1 %v1546_v0 }
  0x62   : > { %1299 = vmatpush3.msra.mxu0 %v526_v54  ;;  %1330 = vmatpush3.msra.mxu1 %v690_v13 }
  0x63   : > { %1300 = vmatprep.subr.mxu0 %v1546_v0  ;;  %1331 = vmatprep.subr.mxu1 %v1546_v0 }
  0x64   : > { %1301 = vmatpush3.msra.mxu0 %v525_v55  ;;  %1332 = vmatpush3.msra.mxu1 %v689_v15  ;;  %v866_v15 = vld [vmem:[#allocation4 + $0x140] sm:$0xff] }
  0x65   : > { %1302 = vmatprep.subr.mxu0 %v1546_v0  ;;  %1333 = vmatprep.subr.mxu1 %v1546_v0 }
  0x66   : > { %1303 = vmatpush3.msra.mxu0 %v524_v56  ;;  %1334 = vmatpush3.msra.mxu1 %v688_v17  ;;  %v864_v17 = vld [vmem:[#allocation4 + $0x130] sm:$0xff] }
  0x67   : > { %1304 = vmatprep.subr.mxu0 %v1546_v0  ;;  %1335 = vmatprep.subr.mxu1 %v1546_v0 }
  0x68   : > { %1305 = vmatpush3.msra.mxu0 %v523_v59  ;;  %1336 = vmatpush3.msra.mxu1 %v687_v19  ;;  %v862_v19 = vld [vmem:[#allocation4 + $0x120] sm:$0xff] }
  0x69   : > { %1306 = vmatprep.subr.mxu0 %v1546_v0  ;;  %1337 = vmatprep.subr.mxu1 %v1546_v0 }
  0x6a   : > { %1307 = vmatpush3.msra.mxu0 %v522_v60  ;;  %1338 = vmatpush3.msra.mxu1 %v686_v21  ;;  %v860_v21 = vld [vmem:[#allocation4 + $0x110] sm:$0xff] }
  0x6b   : > { %1309 = vmatmul.mubr.f32.vlgmr.msra.gmra.mxu0 %v326_v61  ;;  %1358 = vmatprep.subr.mxu0 %v1546_v0 }
  0x6c   : > { %1311 = vmatprep.mubr.msk.f32.mxu0 %vm1547_vm0, %v1546_v0  ;;  %1359 = vmatpush3.msra.mxu0 %v679_v3  ;;  %v872_v3 = vld [vmem:[#allocation4 + $0x170] sm:$0xff] }
  0x6d   : > { %1360 = vmatprep.subr.mxu0 %v1546_v0  ;;  %1339 = vmatprep.subr.mxu1 %v1546_v0 }
  0x6e   : > { %1361 = vmatpush3.msra.mxu0 %v678_v4  ;;  %1340 = vmatpush3.msra.mxu1 %v685_v22  ;;  %v859_v22 = vld [vmem:[#allocation4 + $0x108] sm:$0xff] }
  0x6f   : > { %1312 = vmatmul.mubr.f32.gmra.mxu0 %v325_v63  ;;  %1362 = vmatprep.subr.mxu0 %v1546_v0  ;;  %v873_v63 = vld [vmem:[#allocation4 + $0x178] sm:$0xff] }
  0x70   : > { %1314 = vmatprep.mubr.msk.f32.mxu0 %vm1547_vm0, %v1546_v0  ;;  %1363 = vmatpush3.msra.mxu0 %v677_v6 }
  0x71   : > { %1364 = vmatprep.subr.mxu0 %v1546_v0  ;;  %1341 = vmatprep.subr.mxu1 %v1546_v0 }
  0x72   : > { %1365 = vmatpush3.msra.mxu0 %v676_v8  ;;  %1342 = vmatpush3.msra.mxu1 %v684_v23  ;;  %v870_v8 = vld [vmem:[#allocation4 + $0x160] sm:$0xff] }
  0x73   : > { %1366 = vmatprep.subr.mxu0 %v1546_v0  ;;  %1343 = vmatprep.subr.mxu1 %v1546_v0 }
  0x74   : > { %1367 = vmatpush3.msra.mxu0 %v675_v10  ;;  %1274 = vmatmul.mubr.f32.gmra.mxu1 %v318_v25 }
  0x75   : > { %1368 = vmatprep.subr.mxu0 %v1546_v0  ;;  %1344 = vmatpush3.msra.mxu1 %v683_v26 }
  0x76   : > { %1369 = vmatpush3.msra.mxu0 %v674_v12  ;;  %1345 = vmatprep.subr.mxu1 %v1546_v0  ;;  %v868_v12 = vld [vmem:[#allocation4 + $0x150] sm:$0xff] }
  0x77   : > { %1370 = vmatprep.subr.mxu0 %v1546_v0  ;;  %1346 = vmatpush3.msra.mxu1 %v682_v31 }
  0x78   : > { %1371 = vmatpush3.msra.mxu0 %v673_v14  ;;  %1347 = vmatprep.subr.mxu1 %v1546_v0  ;;  %v867_v14 = vld [vmem:[#allocation4 + $0x148] sm:$0xff] }
  0x79   : > { %1372 = vmatprep.subr.mxu0 %v1546_v0  ;;  %1348 = vmatpush3.msra.mxu1 %v681_v33 }
  0x7a   : > { %1373 = vmatpush3.msra.mxu0 %v672_v16  ;;  %1349 = vmatprep.mubr.msk.f32.mxu1 %vm1547_vm0, %v1546_v0  ;;  %v865_v16 = vld [vmem:[#allocation4 + $0x138] sm:$0xff] }
  0x7b   : > { %1374 = vmatprep.subr.mxu0 %v1546_v0  ;;  %1315 = vmatmul.mubr.f32.gmra.mxu0 %v327_v35 }
  0x7c   : > { %1375 = vmatpush3.msra.mxu0 %v671_v18  ;;  %1399 = vmatprep.subr.mxu1 %v1546_v0  ;;  %v863_v18 = vld [vmem:[#allocation4 + $0x128] sm:$0xff] }
  0x7d   : > { %1376 = vmatprep.subr.mxu0 %v1546_v0  ;;  %1390 = vmatprep.mubr.msk.f32.mxu0 %vm1547_vm0, %v1546_v0 }
  0x7e   : > { %1377 = vmatpush3.msra.mxu0 %v670_v20  ;;  %v861_v20 = vld [vmem:[#allocation4 + $0x118] sm:$0xff] }
  0x7f   : > { %1378 = vmatprep.subr.mxu0 %v1546_v0 }
  0x80   : > { %1379 = vmatpush3.msra.mxu0 %v669_v24  ;;  %v858_v24 = vld [vmem:[#allocation4 + $0x100] sm:$0xff] }
  0x81   : > { %1380 = vmatprep.subr.mxu0 %v1546_v0 }
  0x82   : > { %1381 = vmatpush3.msra.mxu0 %v668_v27  ;;  %v660_v27 = vrot.slane %v1546_v0, 1 }
  0x83   : > { %1382 = vmatprep.subr.mxu0 %v1546_v0 }
  0x84   : > { %1383 = vmatpush3.msra.mxu0 %v667_v32 }
  0x85   : > { %1384 = vmatprep.subr.mxu0 %v1546_v0 }
  0x86   : > { %1385 = vmatpush3.msra.mxu0 %v666_v34 }
  0x87   : > { %1386 = vmatprep.subr.mxu0 %v1546_v0 }
  0x88   : > { %1387 = vmatpush3.msra.mxu0 %v665_v36 }
  0x89   : > { %1388 = vmatprep.subr.mxu0 %v1546_v0 }
  0x8a   : > { %1389 = vmatpush3.msra.mxu0 %v664_v38 }
 0x10b   : > { %v427_v39 = vpop.f32.mrf.mxu0 }
 0x10c   : > { %v507_v40 = vpop.f32.mrf.mxu1 }
 0x10d   : > { %v1228_v41 = vpop.f32.mrf.mxu0  ;;  %v508_v49 = vadd.f32 %v507_v40, %v427_v39 }
 0x10e   : > { %v1269_v42 = vpop.f32.mrf.mxu1 }
 0x10f   : > { %v432_v43 = vpop.f32.mrf.mxu0 }
 0x110   : > { %v512_v44 = vpop.f32.mrf.mxu1 }
 0x111   : > { %v1231_v45 = vpop.f32.mrf.mxu0  ;;  %v513_v55 = vadd.f32 %v512_v44, %v432_v43 }
 0x112   : > { %v1272_v46 = vpop.f32.mrf.mxu1 }
 0x113   : > { %v437_v47 = vpop.f32.mrf.mxu0 }
 0x115   : > { %v1234_v48 = vpop.f32.mrf.mxu0 }
 0x12b   : > { %v604_v50 = vpop.f32.mrf.mxu0 }
 0x12c   : > { %v618_v52 = vadd.f32 %v604_v50, %v508_v49  ;;  %v1076_v50 = vld [vmem:[%s1881_s5] ss:$0 sm:$0xff] }
 0x12d   : > { %v1310_v54 = vpop.f32.mrf.mxu0 }
 0x12e   : > { %v628_v56 = vmul.f32 %v1074_v51, %v618_v52  ;;  %v1077_v52 = vld [vmem:[%s1882_s6] ss:$0 sm:$0xff] }
 0x12f   : > { %v609_v57 = vpop.f32.mrf.mxu0 }
 0x130   : > { %v638_v58 = vadd.f32 %v1075_v53, %v628_v56  ;;  %v619_v59 = vadd.f32 %v609_v57, %v513_v55 }
 0x131   : > { %v1313_v60 = vpop.f32.mrf.mxu0 }
 0x132   : > { %v1805_v61 = vmax.f32 %v638_v58, 0.0  ;;  %v629_v62 = vmul.f32 %v1074_v51, %v619_v59 }
 0x134   : > { %v652_v2 = vrot.slane %v1805_v61, 7  ;;  %1350 = vmatmul.mubr.f32.vlgmr.msra.gmra.mxu1 %v1805_v61  ;;  %v639_v4 = vadd.f32 %v1075_v53, %v629_v62  ;;  %v658_v25 = vrot.slane %v1805_v61, 1  ;;  %v517_v33 = vpop.f32.mrf.mxu1 }
 0x135   : > { %1400 = vmatpush3.msra.mxu1 %v873_v63  ;;  %1352 = vmatprep.mubr.msk.f32.mxu1 %vm1547_vm0, %v1546_v0 }
 0x136   : > { %1401 = vmatprep.subr.mxu1 %v1546_v0  ;;  %v657_v5 = vsel %vm317_vm1, %v654_v1, %v652_v2  ;;  %v1815_v6 = vmax.f32 %v639_v4, 0.0  ;;  %v663_v32 = vsel %vm324_vm2, %v660_v27, %v658_v25  ;;  %v1275_v34 = vpop.f32.mrf.mxu1 }
 0x137   : > { %1402 = vmatpush3.msra.mxu1 %v872_v3  ;;  %1391 = vmatmul.mubr.f32.vlgmr.msra.gmra.mxu0 %v657_v5 }
 0x138   : > { %1403 = vmatprep.subr.mxu1 %v1546_v0  ;;  %1353 = vmatmul.mubr.f32.gmra.mxu1 %v1815_v6  ;;  %v653_v9 = vrot.slane %v1815_v6, 7  ;;  %v659_v23 = vrot.slane %v1815_v6, 1 }
 0x139   : > { %1404 = vmatpush3.msra.mxu1 %v871_v7  ;;  %1393 = vmatprep.mubr.msk.f32.mxu0 %vm1547_vm0, %v1546_v0 }
 0x13a   : > { %1405 = vmatprep.subr.mxu1 %v1546_v0  ;;  %v656_v10 = vsel %vm317_vm1, %v652_v2, %v653_v9  ;;  %1355 = vmatprep.mubr.msk.f32.mxu1 %vm1547_vm0, %v1546_v0  ;;  %v655_v13 = vsel %vm317_vm1, %v653_v9, %v654_v1  ;;  %v662_v26 = vsel %vm324_vm2, %v658_v25, %v659_v23 }
 0x13b   : > { %1406 = vmatpush3.msra.mxu1 %v870_v8  ;;  %1394 = vmatmul.mubr.f32.gmra.mxu0 %v656_v10  ;;  %v661_v31 = vsel %vm324_vm2, %v659_v23, %v660_v27  ;;  %v614_v35 = vpop.f32.mrf.mxu0 }
 0x13c   : > { %1407 = vmatprep.subr.mxu1 %v1546_v0  ;;  %1396 = vmatprep.mubr.msk.f32.mxu0 %vm1547_vm0, %v1546_v0 }
 0x13d   : > { %1408 = vmatpush3.msra.mxu1 %v869_v11  ;;  %v1316_v36 = vpop.f32.mrf.mxu0 }
 0x13e   : > { %1409 = vmatprep.subr.mxu1 %v1546_v0  ;;  %1356 = vmatmul.mubr.f32.gmra.mxu1 %v1546_v0 }
 0x13f   : > { %1410 = vmatpush3.msra.mxu1 %v868_v12  ;;  %1397 = vmatmul.mubr.f32.gmra.mxu0 %v655_v13 }
 0x140   : > { %1411 = vmatprep.subr.mxu1 %v1546_v0  ;;  %1431 = vmatprep.mubr.msk.f32.mxu1 %vm1547_vm0, %v1546_v0 }
 0x141   : > { %1412 = vmatpush3.msra.mxu1 %v867_v14 }
 0x142   : > { %1413 = vmatprep.subr.mxu1 %v1546_v0 }
 0x143   : > { %1414 = vmatpush3.msra.mxu1 %v866_v15 }
 0x144   : > { %1415 = vmatprep.subr.mxu1 %v1546_v0 }
 0x145   : > { %1416 = vmatpush3.msra.mxu1 %v865_v16 }
 0x146   : > { %1417 = vmatprep.subr.mxu1 %v1546_v0 }
 0x147   : > { %1418 = vmatpush3.msra.mxu1 %v864_v17 }
 0x148   : > { %1419 = vmatprep.subr.mxu1 %v1546_v0 }
 0x149   : > { %1420 = vmatpush3.msra.mxu1 %v863_v18 }
 0x14a   : > { %1421 = vmatprep.subr.mxu1 %v1546_v0 }
 0x14b   : > { %1422 = vmatpush3.msra.mxu1 %v862_v19 }
 0x14c   : > { %1423 = vmatprep.subr.mxu1 %v1546_v0 }
 0x14d   : > { %1424 = vmatpush3.msra.mxu1 %v861_v20 }
 0x14e   : > { %1425 = vmatprep.subr.mxu1 %v1546_v0 }
 0x14f   : > { %1426 = vmatpush3.msra.mxu1 %v860_v21 }
 0x150   : > { %1427 = vmatprep.subr.mxu1 %v1546_v0 }
 0x151   : > { %1428 = vmatpush3.msra.mxu1 %v859_v22 }
 0x152   : > { %1429 = vmatprep.subr.mxu1 %v1546_v0 }
 0x153   : > { %1430 = vmatpush3.msra.mxu1 %v858_v24 }
 0x154   : > { %1432 = vmatmul.mubr.f32.vlgmr.msra.gmra.mxu1 %v662_v26 }
 0x155   : > { %1434 = vmatprep.mubr.msk.f32.mxu1 %vm1547_vm0, %v1546_v0 }
 0x158   : > { %1435 = vmatmul.mubr.f32.gmra.mxu1 %v661_v31 }
 0x159   : > { %1437 = vmatprep.mubr.msk.f32.mxu1 %vm1547_vm0, %v1546_v0 }
 0x15c   : > { %1438 = vmatmul.mubr.f32.gmra.mxu1 %v663_v32 }
 0x1f4   : > { %v763_v38 = vpop.f32.mrf.mxu1 }
 0x1f6   : > { %v1351_v39 = vpop.f32.mrf.mxu1 }
 0x1f7   : > { %v843_v40 = vpop.f32.mrf.mxu0 }
 0x1f8   : > { %v768_v41 = vpop.f32.mrf.mxu1  ;;  %v844_v30 = vadd.f32 %v843_v40, %v763_v38 }
 0x1f9   : > { %v1392_v42 = vpop.f32.mrf.mxu0 }
 0x1fa   : > { %v1354_v43 = vpop.f32.mrf.mxu1 }
 0x1fb   : > { %v848_v44 = vpop.f32.mrf.mxu0 }
 0x1fc   : > { %v849_v54 = vadd.f32 %v848_v44, %v768_v41 }
 0x1fd   : > { %v1395_v45 = vpop.f32.mrf.mxu0 }
 0x1fe   : > { %v773_v46 = vpop.f32.mrf.mxu1 }
 0x1ff   : > { %v853_v47 = vpop.f32.mrf.mxu0 }
 0x200   : > { %v1357_v48 = vpop.f32.mrf.mxu1  ;;  %v854_v60 = vadd.f32 %v853_v47, %v773_v46 }
 0x201   : > { %v1398_v0 = vpop.f32.mrf.mxu0 }
 0x214   : > { %v940_v49 = vpop.f32.mrf.mxu1 }
 0x215   : > { %v954_v51 = vadd.f32 %v940_v49, %v844_v30 }
 0x216   : > { %v1433_v53 = vpop.f32.mrf.mxu1 }
 0x217   : > { %v964_v55 = vmul.f32 %v1076_v50, %v954_v51 }
 0x218   : > { %v945_v56 = vpop.f32.mrf.mxu1 }
 0x219   : > { %v974_v57 = vadd.f32 %v1077_v52, %v964_v55  ;;  %v955_v58 = vadd.f32 %v945_v56, %v849_v54 }
 0x21a   : > { %v1436_v59 = vpop.f32.mrf.mxu1 }
 0x21b   : > { %v977_v61 = vadd.f32 %v974_v57, %v1677_v28  ;;  %v965_v62 = vmul.f32 %v1076_v50, %v955_v58 }
 0x21c   : > { %v950_v63 = vpop.f32.mrf.mxu1 }
 0x21d   : > { %v980_v1 = vmax.f32 %v977_v61, 0.0  ;;  %v975_v2 = vadd.f32 %v1077_v52, %v965_v62  ;;  %v956_v3 = vadd.f32 %v950_v63, %v854_v60 }
 0x21e   : > { %v1439_v4 = vpop.f32.mrf.mxu1 }
 0x21f   : > { %983 = vst [vmem:[%s308_s10] sm:$0xff] %v980_v1  ;;  %v978_v5 = vadd.f32 %v975_v2, %v1690_v37  ;;  %v966_v6 = vmul.f32 %v1076_v50, %v956_v3 }
 0x221   : > { %v981_v7 = vmax.f32 %v978_v5, 0.0  ;;  %v976_v8 = vadd.f32 %v1077_v52, %v966_v6 }
 0x223   : > { %984 = vst [vmem:[%s308_s10 + $0x8] sm:$0xff] %v981_v7  ;;  %v979_v28 = vadd.f32 %v976_v8, %v1679_v29 }
 0x225   : > { %v982_v9 = vmax.f32 %v979_v28, 0.0 }
 0x227   : > { %985 = vst [vmem:[%s308_s10 + $0x10] sm:$0xff] %v982_v9 }
 0x228 PF: > { %s19_s24 = sadd.s32 1, %s1540_s24  }
 0x229   : > { %p16_p3 = scmp.ge.s32.totalorder %s19_s24, 4  }
 0x22b   :  { %18 = sbr.rel (!%p16_p3) target bundleno = 2 (0x2), region = 91 }
 0x230   :  { %1007 = vsyncpa [#allocation3], 1 }
 0x231   :  { %1009 = vsyncpa [#allocation3 + $0x1], 1 }
 0x232   :  { %1010 = vsyncpa [#allocation5], 1 }

</bundles_post_ra>
